<compile_context>
chip_gen: v7x
topology: tpu7x:2x2x1
jax: 0.10.0
libtpu: 0.0.40
codegen_flags: <defaults>
</compile_context>

<pallas_src>
import functools

import jax
import jax.numpy as jnp
from jax import lax
from jax.experimental import pallas as pl
from jax.experimental.pallas import tpu as pltpu


def gate_kernel(x_ref, w_ref, b_ref, out_ref):
    """Fused Linear + softmax for one (TB, D) tile of rows, lane-dense output.

    x_ref  : (TB, D)  input rows (native dtype)
    w_ref  : (E, D)   fc weight in PyTorch layout (native dtype)
    b_ref  : (E, 1)   fc bias (f32)
    out_ref: (E, TB)  softmax(W @ x^T + b, over the E/sublane axis)
    """
    x = x_ref[...]
    w = w_ref[...]

    # (E, D) contracted with (TB, D) on D -> (E, TB).  Batch rows stay on the
    # lane axis; f32 accumulation on the MXU.
    logits = lax.dot_general(
        w, x,
        dimension_numbers=(((1,), (1,)), ((), ())),
        preferred_element_type=jnp.float32,
    )
    logits = logits + b_ref[...]                            # (E, TB) + (E, 1)

    # Numerically-stable softmax along the expert (sublane) axis.
    m = jnp.max(logits, axis=0, keepdims=True)              # (1, TB)
    e = jnp.exp(logits - m)                                 # (E, TB)
    denom = jnp.sum(e, axis=0, keepdims=True)               # (1, TB)

    # EUP approximate reciprocal + one Newton-Raphson step -> ~full f32
    # accuracy without occupying VALU divide slots.
    inv = pl.reciprocal(denom, approx=True)
    inv = inv * (2.0 - denom * inv)

    out_ref[...] = (e * inv).astype(out_ref.dtype)


def _padded_tile_bytes(tb, D, E, itemsize=4):
    """Layout-aware (8,128)-padded VMEM bytes for one x tile + one out tile."""
    d_lanes = -(-D // 128) * 128          # x tile last dim padded to 128
    tb_rows = -(-tb // 8) * 8             # x tile second-to-last padded to 8
    e_rows = -(-E // 8) * 8               # out tile second-to-last padded to 8
    tb_lanes = -(-tb // 128) * 128        # out tile last dim padded to 128
    x_bytes = tb_rows * d_lanes * itemsize
    out_bytes = e_rows * tb_lanes * itemsize
    return x_bytes, out_bytes


def _pick_block_b(B, D, E):
    """Largest 128-multiple batch tile within the VMEM budget, with >= 2 grid
    steps (so v7x's two TensorCores both get work).  Otherwise one full block."""
    budget = 16 << 20  # double-buffered streamed tiles kept under ~16 MiB
    for tb in (32768, 16384, 8192, 4096, 2048, 1024, 512, 256, 128):
        x_b, o_b = _padded_tile_bytes(tb, D, E)
        if 2 * (x_b + o_b) <= budget and B >= 2 * tb:
            return tb
    # Small / awkward batch: one full-extent block (always legal, grid = 1).
    return B


def _vmem_limit_bytes(tb, D, E):
    x_b, o_b = _padded_tile_bytes(tb, D, E)
    d_lanes = -(-D // 128) * 128
    e_rows = -(-E // 8) * 8
    w_b = e_rows * d_lanes * 4
    b_b = e_rows * 128 * 4
    # double-buffered streamed tiles + (possibly double-buffered) resident
    # weight/bias + slack for compiler scratch.
    need = 2 * (x_b + o_b) + 2 * (w_b + b_b)
    # Clamp below v7x's 64 MiB physical VMEM; fine (conservative) on v5e/v6e.
    return int(min(max(2 * need, 32 << 20), 48 << 20))


@functools.partial(jax.jit, static_argnames=("block_b",))
def gate_forward(x, weight, bias, *, block_b=None):
    """softmax(x @ weight.T + bias, axis=-1) — PyTorch Gate.forward.

    x      : (..., D)   float input
    weight : (E, D)     PyTorch nn.Linear weight layout
    bias   : (E,)       PyTorch nn.Linear bias
    returns: (..., E)   gating probabilities
    """
    *lead, D = x.shape
    E = weight.shape[0]

    x2d = x.reshape(-1, D)
    B = x2d.shape[0]

    if block_b is not None:
        tb = block_b
        if tb < B:
            assert tb % 128 == 0, "manual block_b must be a multiple of 128"
    else:
        tb = _pick_block_b(B, D, E)

    # Pad the batch axis to a multiple of the tile; padded rows are sliced off.
    n_steps = max(-(-B // tb), 1)
    B_pad = n_steps * tb
    if B_pad != B:
        x2d = jnp.pad(x2d, ((0, B_pad - B), (0, 0)))

    w = weight.astype(x.dtype)                        # (E, D), native dtype
    b2d = bias.reshape(E, 1).astype(jnp.float32)      # (E, 1), f32

    out_t = pl.pallas_call(
        gate_kernel,
        out_shape=jax.ShapeDtypeStruct((E, B_pad), x.dtype),
        grid_spec=pltpu.PrefetchScalarGridSpec(
            num_scalar_prefetch=0,
            grid=(n_steps,),
            in_specs=[
                pl.BlockSpec((tb, D), lambda i: (i, 0)),   # streamed row tile
                pl.BlockSpec((E, D), lambda i: (0, 0)),    # resident weight
                pl.BlockSpec((E, 1), lambda i: (0, 0)),    # resident bias
            ],
            out_specs=pl.BlockSpec((E, tb), lambda i: (0, i)),  # lane-dense
        ),
        compiler_params=pltpu.CompilerParams(
            dimension_semantics=("parallel",),             # shardable on v7x 2-TC
            vmem_limit_bytes=_vmem_limit_bytes(tb, D, E),
        ),
    )(x2d, w, b2d)

    out2d = out_t.T[:B]                                    # (B, E)
    return out2d.reshape(*lead, E)


def gate_reference(x, weight, bias):
    logits = jnp.einsum("...d,ed->...e", x, weight) + bias
    return jax.nn.softmax(logits, axis=-1)


if __name__ == "__main__":
    key = jax.random.PRNGKey(0)
    k_x, k_w, k_b = jax.random.split(key, 3)

    # Small shapes consistent with the module: Gate(input_size=32, num_experts=4)
    # applied to a (batch=2, seq=8, input_size=32) activation tensor.
    batch, seq, input_size, num_experts = 2, 8, 32, 4

    x = jax.random.normal(k_x, (batch, seq, input_size), dtype=jnp.float32)
    bound = 1.0 / (input_size ** 0.5)  # matches nn.Linear default init range
    weight = jax.random.uniform(
        k_w, (num_experts, input_size), minval=-bound, maxval=bound,
        dtype=jnp.float32)
    bias = jax.random.uniform(
        k_b, (num_experts,), minval=-bound, maxval=bound, dtype=jnp.float32)

    probs = gate_forward(x, weight, bias)
    jax.block_until_ready(probs)

    probs_ref = gate_reference(x, weight, bias)
    assert probs.shape == (batch, seq, num_experts)
    assert jnp.allclose(probs, probs_ref, atol=1e-5, rtol=1e-5)
    # rows must sum to 1 (softmax)
    assert jnp.allclose(jnp.sum(probs, axis=-1), 1.0, atol=1e-5)

    print("KERNEL_OK")
</pallas_src>

<mosaic_0001>
module attributes {stable_mosaic.version = 11 : i64} {
  func.func @gate_kernel(%arg0: i32, %arg1: memref<16x32xf32, #tpu.memory_space<vmem>>, %arg2: memref<4x32xf32, #tpu.memory_space<vmem>>, %arg3: memref<4x1xf32, #tpu.memory_space<vmem>>, %arg4: memref<4x16xf32, #tpu.memory_space<vmem>>) attributes {dimension_semantics = [#tpu.dimension_semantics<parallel>], iteration_bounds = array<i64: 1>, scalar_prefetch = 0 : i64, scratch_operands = 0 : i64, tpu.core_type = #tpu.core_type<tc>, window_params = [{transform_indices = @transform_0, window_bounds = array<i64: 16, 32>}, {pipeline_mode = #tpu.pipeline_mode<synchronous>, transform_indices = @transform_1, window_bounds = array<i64: 4, 32>}, {pipeline_mode = #tpu.pipeline_mode<synchronous>, transform_indices = @transform_2, window_bounds = array<i64: 4, 1>}, {transform_indices = @transform_3, window_bounds = array<i64: 4, 16>}]} {
    %c0 = arith.constant 0 : index
    %c0_0 = arith.constant 0 : index
    %0 = vector.load %arg1[%c0, %c0_0] : memref<16x32xf32, #tpu.memory_space<vmem>>, vector<16x32xf32>
    %c0_1 = arith.constant 0 : index
    %c0_2 = arith.constant 0 : index
    %1 = vector.load %arg2[%c0_1, %c0_2] : memref<4x32xf32, #tpu.memory_space<vmem>>, vector<4x32xf32>
    %cst = arith.constant dense<0.000000e+00> : vector<4x16xf32>
    %2 = tpu.matmul %1, %0, %cst {dimension_numbers = #tpu.dot_dimension_numbers<[1], [1], [0], [0], [0, 0, 1, 0], [], []>} : vector<4x32xf32>, vector<16x32xf32>, vector<4x16xf32> -> vector<4x16xf32>
    %c0_3 = arith.constant 0 : index
    %c0_4 = arith.constant 0 : index
    %3 = vector.load %arg3[%c0_3, %c0_4] : memref<4x1xf32, #tpu.memory_space<vmem>>, vector<4x1xf32>
    %4 = vector.broadcast %3 : vector<4x1xf32> to vector<4x16xf32>
    %5 = arith.addf %2, %4 : vector<4x16xf32>
    %cst_5 = arith.constant dense<0xFF800000> : vector<16xf32>
    %6 = vector.multi_reduction <maximumf>, %5, %cst_5 [0] : vector<4x16xf32> to vector<16xf32>
    %7 = vector.shape_cast %6 : vector<16xf32> to vector<1x16xf32>
    %8 = vector.broadcast %7 : vector<1x16xf32> to vector<4x16xf32>
    %9 = arith.subf %5, %8 : vector<4x16xf32>
    %10 = math.exp %9 : vector<4x16xf32>
    %cst_6 = arith.constant dense<0.000000e+00> : vector<16xf32>
    %11 = vector.multi_reduction <add>, %10, %cst_6 [0] : vector<4x16xf32> to vector<16xf32>
    %12 = vector.shape_cast %11 : vector<16xf32> to vector<1x16xf32>
    %13 = tpu.reciprocal %12 {approx = true} : vector<1x16xf32> -> vector<1x16xf32>
    %14 = arith.mulf %12, %13 : vector<1x16xf32>
    %cst_7 = arith.constant 2.000000e+00 : f32
    %15 = vector.broadcast %cst_7 : f32 to vector<1x16xf32>
    %16 = arith.subf %15, %14 : vector<1x16xf32>
    %17 = arith.mulf %13, %16 : vector<1x16xf32>
    %18 = vector.broadcast %17 : vector<1x16xf32> to vector<4x16xf32>
    %19 = arith.mulf %10, %18 : vector<4x16xf32>
    %c0_8 = arith.constant 0 : index
    %c0_9 = arith.constant 0 : index
    %20 = vector.load %arg4[%c0_8, %c0_9] : memref<4x16xf32, #tpu.memory_space<vmem>>, vector<4x16xf32>
    tpu.vector_store %arg4[%c0_8, %c0_9], %19 {strides = array<i32>} : memref<4x16xf32, #tpu.memory_space<vmem>>, vector<4x16xf32>,
    return
  }
  func.func @transform_0(%arg0: i32) -> (i32, i32) {
    %c0_i32 = arith.constant 0 : i32
    %c0_i32_0 = arith.constant 0 : i32
    return %arg0, %c0_i32 : i32, i32
  }
  func.func @transform_1(%arg0: i32) -> (i32, i32) {
    %c0_i32 = arith.constant 0 : i32
    %c0_i32_0 = arith.constant 0 : i32
    %c0_i32_1 = arith.constant 0 : i32
    return %c0_i32, %c0_i32_0 : i32, i32
  }
  func.func @transform_2(%arg0: i32) -> (i32, i32) {
    %c0_i32 = arith.constant 0 : i32
    %c0_i32_0 = arith.constant 0 : i32
    %c0_i32_1 = arith.constant 0 : i32
    return %c0_i32, %c0_i32_0 : i32, i32
  }
  func.func @transform_3(%arg0: i32) -> (i32, i32) {
    %c0_i32 = arith.constant 0 : i32
    %c0_i32_0 = arith.constant 0 : i32
    return %c0_i32, %arg0 : i32, i32
  }
}

</mosaic_0001>

<bundles_post_ra>
// kernel: gate_forward.1
= control target key start
LH: loop header
LB: loop body
LE: loop exit
PB: predicated region body
PF: predicated region fallthrough
CT: control target
= control target key end

     0   :  { %8 = vsyncpa [#allocation3], 0  ;;  %s199_s12 = smov [#allocation2]   ;;  %s250_s0 = inlined_call_operand.hbm [shape: f32[16,32], index: 0, kind: input, shape index: {}]   ;;  %s251_s1 = inlined_call_operand.vmem [shape: f32[4,32], index: 1, kind: input, shape index: {}]   ;;  %s252_s2 = inlined_call_operand.vmem [shape: f32[4,1], index: 2, kind: input, shape index: {}]   ;;  %s253_s3 = inlined_call_operand.vmem [shape: f32[4,16], index: 3, kind: output, shape index: {}]  }
   0x1   :  { %s14_s13 = sshll.u32 %s199_s12, 4  ;;  %s175_s16 = scalar_lea.hbm %s250_s0, 256  ;;  %s15_s13 = int_to_ptr.vmem [resolvable:$true] %s14_s13 }
   0x2   :  { %p176_p0 = scmp.ne.s32.totalorder %s250_s0, %s175_s16  ;;  %p179_p1 = scmp.lt.u32.totalorder %s175_s16, %s250_s0 }
   0x4   :  { %p181_p2 = pnand %p179_p1, %p176_p0 }
   0x6   :  { %184 = shalt.err (!%p181_p2)
}
   0x7   :  { %s185_s21 = scalar_lea.vmem %s15_s13, 256  ;;  %p190_p4 = scmp.lt.s32.totalorder %s15_s13, %s15_s13 }
   0x8   :  { %p186_p3 = scmp.ne.s32.totalorder %s15_s13, %s185_s21  ;;  %p191_p5 = scmp.lt.s32.totalorder %s185_s21, %s185_s21 }
   0xa   :  { %p192_p6 = por %p191_p5, %p190_p4 }
   0xc   :  { %p193_p7 = pnand %p192_p6, %p186_p3 }
   0xe   :  { %196 = shalt.err (!%p193_p7)
}
   0xf   :  { %s200_s22 = smov 128   ;;  %s201_s23 = smov 8  }
  0x10   :  { %20 = dma.hbm_to_vmem [thread:$0]  %s250_s0, 256, %s15_s13, [#allocation3], %s200_s22, %s200_s22, %s201_s23  }
  0x11   :  { %197 = dma.done.wait [#allocation3], 256  }
  0x12   :  { %198 = vsyncadd [#allocation3], 4294967040  ;;  %v202_v0 = vmov 0.0|0.0   ;;  %vm203_vm0 = vmmov 0   ;;  %v204_v1 = vmov 0.0   ;;  %v205_v2 = vmov 0  }
  0x13   :  { %159 = vmatprep.subr.bf16.mxu0 %v202_v0  ;;  %156 = vmatprep.mubr.msk.f32.mxu0 %vm203_vm0, %v204_v1  ;;  %vm37_vm1 = vcmask 261120   ;;  %v28_v3 = vld [vmem:[#allocation2] sm:$0xff]  ;;  %v29_v4 = vld [vmem:[#allocation2 + $0x8] sm:$0xff]  ;;  %vm117_vm3 = vcmask 125952  }
  0x14   :  { %170 = vset.pattern.permute.xlu0 %v205_v2  ;;  %vm161_vm2 = vmpackc.low %vm37_vm1, %vm37_vm1  ;;  %v160_v5 = vpack.c.bf16 %v29_v4, %v28_v3  ;;  %v31_v6 = vld [vmem:[%s252_s2] sm:$0xf] }
  0x15   :  { %34 = vperm.xlu0 %170, %v31_v6   ;;  %v30_v7 = vld [vmem:[%s251_s1] sm:$0xf] }
  0x16   :  { %162 = vmatpush3.bf16.xpose.msk.msra.mxu0 %vm161_vm2, %v160_v5 }
  0x1d   :  { %157 = vmatmul.mubr.msk.f32.vlgmr.msra.gmra.mrb[0].mxu0 %vm37_vm1, %v30_v7 }
  0x94   :  { %v35_v8 = vpop.permute.xlu0 %34 }
  0xf0   :  { %v113_v9 = vpop.f32.mrb[0].mxu0 }
  0xf1   :  { %v114_v10 = vadd.f32 %v113_v9, %v35_v8  ;;  %v158_v11 = vpop.f32.mrb[1].mxu0 }
  0xf3   :  { %v118_v12 = vsel %vm117_vm3, %v114_v10, -inf }
  0xf4   :  { %v119_v13 = vrot.slane %v118_v12, 4 }
  0xf6   :  { %v120_v14 = vmax.f32 %v118_v12, %v119_v13 }
  0xf8   :  { %v121_v15 = vrot.slane %v120_v14, 2 }
  0xfa   :  { %v122_v16 = vmax.f32 %v120_v14, %v121_v15 }
  0xfc   :  { %v123_v17 = vrot.slane %v122_v16, 1 }
  0xfe   :  { %v124_v18 = vmax.f32 %v122_v16, %v123_v17 }
 0x100   :  { %v125_v19 = vsub.f32 %v114_v10, %v124_v18 }
 0x102   :  { %v126_v20 = vmul.f32 1.442695, %v125_v19 }
 0x104   :  { %171 = vpow2.f32 %v126_v20 }
 0x10e   :  { %v172_v21 = vpop.eup %171 }
 0x10f   :  { %v128_v22 = vsel %vm117_vm3, %v172_v21, 0.0 }
 0x110   :  { %v129_v23 = vrot.slane %v128_v22, 4 }
 0x112   :  { %v130_v24 = vadd.f32 %v129_v23, %v128_v22 }
 0x114   :  { %v131_v25 = vrot.slane %v130_v24, 2 }
 0x116   :  { %v132_v26 = vadd.f32 %v131_v25, %v130_v24 }
 0x118   :  { %v133_v27 = vrot.slane %v132_v26, 1 }
 0x11a   :  { %v134_v28 = vadd.f32 %v133_v27, %v132_v26 }
 0x11c   :  { %173 = vrcp.f32 %v134_v28 }
 0x126   :  { %v174_v29 = vpop.eup %173 }
 0x127   :  { %v136_v30 = vmul.f32 %v174_v29, %v134_v28 }
 0x129   :  { %v137_v31 = vsub.f32 2.0, %v136_v30 }
 0x12b   :  { %v138_v32 = vmul.f32 %v174_v29, %v137_v31 }
 0x12d   :  { %v139_v33 = vmul.f32 %v172_v21, %v138_v32 }
 0x12f   :  { %140 = vst.msk [vmem:[%s253_s3] sm:$0xf] %vm117_vm3, %v139_v33 }
 0x130   :  { %145 = vsyncpa [#allocation3], 1 }

</bundles_post_ra>
